<compile_context>
chip_gen: v6e
topology: v6e:2x2x1
jax: 0.10.0
libtpu: 0.0.40
codegen_flags: <defaults>
</compile_context>

<pallas_src>
import functools

import jax
import jax.numpy as jnp
from jax import lax
from jax.experimental import pallas as pl
from jax.experimental.pallas import tpu as pltpu


def _round_up(x, m):
    return (x + m - 1) // m * m


def _fused_conv_l1_kernel(po_ref, pt_ref, w_ref, b_ref, mask_ref, out_ref,
                          *, L, WP, C_out):
    """One grid step = one (out, target) image pair.

    po_ref/pt_ref : (1, C_in, FLAT) zero-padded, row-major flattened images (bf16)
    w_ref         : (9, C_out, C_in) conv taps, k = kh*3 + kw           (bf16)
    b_ref         : (C_out, 1) bias                                     (f32)
    mask_ref      : (1, L) 1.0 at valid output positions, 0.0 at pad    (f32)
    out_ref       : (1, 1, 1) per-partition running |diff| sum          (f32)
    """
    step = pl.program_id(1)

    @pl.when(step == 0)
    def _init():
        out_ref[...] = jnp.zeros_like(out_ref)

    xo = po_ref[0]                    # (C_in, FLAT) bf16
    xt = pt_ref[0]

    # Bias folded into the accumulator init (added once, broadcast over lanes).
    base = jnp.broadcast_to(b_ref[...], (C_out, L))      # (C_out, L) f32
    fo = base
    ft = base

    # Fused im2col: 9 lane-shifted views of the padded image, each contracted
    # against its (C_out, C_in) tap on the MXU with f32 accumulation.
    for k in range(9):
        kh, kw = divmod(k, 3)
        off = kh * WP + kw
        wk = w_ref[k]                 # (C_out, C_in) bf16
        fo = fo + jnp.dot(wk, xo[:, off:off + L],
                          preferred_element_type=jnp.float32)
        ft = ft + jnp.dot(wk, xt[:, off:off + L],
                          preferred_element_type=jnp.float32)

    # Loss-network ReLU + L1 in f32 on lane-dense (C_out, L) tiles.
    fo = jnp.maximum(fo, 0.0)
    ft = jnp.maximum(ft, 0.0)
    diff = jnp.abs(fo - ft) * mask_ref[...]   # mask out the padding columns
    out_ref[...] += jnp.sum(diff)


def detection_loss(out_images, target_images, conv_w, conv_b,
                   *, compute_dtype=jnp.bfloat16):
    """Mean-L1 between frozen Conv2d(3x3, pad=1)+ReLU features of two images."""
    N, C, H, W = out_images.shape
    C_out, C_in, KH, KW = conv_w.shape
    assert (C_in, KH, KW) == (C, 3, 3)

    WP = W + 2                                  # padded width (pad=1 each side)
    L = H * WP                                  # lane-dense flattened span
    FLAT = _round_up(L + 2 * WP + 2, 128)       # halo for 9 taps, lane-aligned

    def flat_pad(x):
        xp = jnp.pad(x.astype(compute_dtype), ((0, 0), (0, 0), (1, 1), (1, 1)))
        xf = xp.reshape(N, C, (H + 2) * WP)
        return jnp.pad(xf, ((0, 0), (0, 0), (0, FLAT - (H + 2) * WP)))

    po = flat_pad(out_images)                                   # (N, C, FLAT)
    pt = flat_pad(target_images)                                # (N, C, FLAT)
    w_taps = jnp.transpose(conv_w, (2, 3, 0, 1)).reshape(9, C_out, C)
    w_taps = w_taps.astype(compute_dtype)                       # (9, C_out, C)
    bias = conv_b.reshape(C_out, 1).astype(jnp.float32)         # (C_out, 1)
    cols = jnp.arange(L, dtype=jnp.int32) % WP
    mask = (cols < W).astype(jnp.float32).reshape(1, L)         # (1, L)

    # Parallel partitions over batch (uses both TensorCores on v7x).
    P = 2 if (N % 2 == 0 and N >= 2) else 1
    n_per = N // P

    kernel = functools.partial(_fused_conv_l1_kernel, L=L, WP=WP, C_out=C_out)

    in_bytes = jnp.dtype(compute_dtype).itemsize
    cost = pl.CostEstimate(
        flops=2 * 2 * 9 * N * C_out * C * L,
        transcendentals=0,
        bytes_accessed=(2 * N * C * FLAT * in_bytes
                        + 9 * C_out * C * in_bytes + C_out * 4 + L * 4 + P * 4),
    )

    grid_spec = pltpu.PrefetchScalarGridSpec(
        num_scalar_prefetch=0,
        grid=(P, n_per),
        in_specs=[
            pl.BlockSpec((1, C, FLAT), lambda p, i: (p * n_per + i, 0, 0)),
            pl.BlockSpec((1, C, FLAT), lambda p, i: (p * n_per + i, 0, 0)),
            pl.BlockSpec((9, C_out, C), lambda p, i: (0, 0, 0)),  # resident
            pl.BlockSpec((C_out, 1), lambda p, i: (0, 0)),        # resident
            pl.BlockSpec((1, L), lambda p, i: (0, 0)),            # resident
        ],
        out_specs=pl.BlockSpec((1, 1, 1), lambda p, i: (p, 0, 0)),
    )

    partials = pl.pallas_call(
        kernel,
        out_shape=jax.ShapeDtypeStruct((P, 1, 1), jnp.float32),
        grid_spec=grid_spec,
        compiler_params=pltpu.CompilerParams(
            dimension_semantics=("parallel", "arbitrary"),
            vmem_limit_bytes=32 * 1024 * 1024,
        ),
        cost_estimate=cost,
    )(po, pt, w_taps, bias, mask)

    return jnp.sum(partials) / (N * C_out * H * W)


if __name__ == "__main__":
    key = jax.random.PRNGKey(0)
    k1, k2, k3, k4 = jax.random.split(key, 4)

    N, C_in, H, W = 2, 4, 16, 16
    C_out, K = 8, 3

    out_images = jax.random.normal(k1, (N, C_in, H, W), dtype=jnp.float32)
    target_images = jax.random.normal(k2, (N, C_in, H, W), dtype=jnp.float32)

    # Deterministic frozen "loss network" parameters (no checkpoint loading).
    conv_w = 0.1 * jax.random.normal(k3, (C_out, C_in, K, K), dtype=jnp.float32)
    conv_b = 0.01 * jax.random.normal(k4, (C_out,), dtype=jnp.float32)

    loss = jax.jit(detection_loss)(out_images, target_images, conv_w, conv_b)
    jax.block_until_ready(loss)

    # Pure-JAX reference with the same bf16 operand rounding, f32 accumulation.
    def bf16_round(x):
        return x.astype(jnp.bfloat16).astype(jnp.float32)

    w_r = bf16_round(conv_w)

    def ref_features(x):
        y = lax.conv_general_dilated(
            x, w_r, window_strides=(1, 1), padding="SAME",
            dimension_numbers=("NCHW", "OIHW", "NCHW"),
            precision=lax.Precision.HIGHEST)
        return jnp.maximum(y + conv_b[None, :, None, None], 0.0)

    ref = jnp.mean(jnp.abs(ref_features(bf16_round(out_images))
                           - ref_features(bf16_round(target_images))))
    assert jnp.allclose(loss, ref, rtol=1e-4, atol=1e-6), (loss, ref)

    print("KERNEL_OK")
</pallas_src>

<mosaic_0001>
module attributes {stable_mosaic.version = 11 : i64} {
  func.func @_fused_conv_l1_kernel(%arg0: i32, %arg1: i32, %arg2: memref<1x4x384xbf16, #tpu.memory_space<vmem>>, %arg3: memref<1x4x384xbf16, #tpu.memory_space<vmem>>, %arg4: memref<9x8x4xbf16, #tpu.memory_space<vmem>>, %arg5: memref<8x1xf32, #tpu.memory_space<vmem>>, %arg6: memref<1x288xf32, #tpu.memory_space<vmem>>, %arg7: memref<1x1x1xf32, #tpu.memory_space<vmem>>) attributes {dimension_semantics = [#tpu.dimension_semantics<parallel>, #tpu.dimension_semantics<arbitrary>], iteration_bounds = array<i64: 2, 1>, scalar_prefetch = 0 : i64, scratch_operands = 0 : i64, tpu.core_type = #tpu.core_type<tc>, window_params = [{transform_indices = @transform_0, window_bounds = array<i64: 1, 4, 384>}, {transform_indices = @transform_1, window_bounds = array<i64: 1, 4, 384>}, {pipeline_mode = #tpu.pipeline_mode<synchronous>, transform_indices = @transform_2, window_bounds = array<i64: 9, 8, 4>}, {pipeline_mode = #tpu.pipeline_mode<synchronous>, transform_indices = @transform_3, window_bounds = array<i64: 8, 1>}, {pipeline_mode = #tpu.pipeline_mode<synchronous>, transform_indices = @transform_4, window_bounds = array<i64: 1, 288>}, {transform_indices = @transform_5, window_bounds = array<i64: 1, 1, 1>}]} {
    %c0_i32 = arith.constant 0 : i32
    %0 = arith.cmpi eq, %arg1, %c0_i32 : i32
    %1 = arith.extui %0 : i1 to i32
    %c0_i32_0 = arith.constant 0 : i32
    %2 = arith.cmpi ne, %1, %c0_i32_0 : i32
    scf.if %2 {
      %cst_55 = arith.constant 0.000000e+00 : f32
      %99 = vector.broadcast %cst_55 : f32 to vector<1x1x1xf32>
      %c0_56 = arith.constant 0 : index
      %c0_57 = arith.constant 0 : index
      %c0_58 = arith.constant 0 : index
      %100 = vector.load %arg7[%c0_56, %c0_57, %c0_58] : memref<1x1x1xf32, #tpu.memory_space<vmem>>, vector<1x1x1xf32>
      tpu.vector_store %arg7[%c0_56, %c0_57, %c0_58], %99 {strides = array<i32>} : memref<1x1x1xf32, #tpu.memory_space<vmem>>, vector<1x1x1xf32>,
    } else {
    }
    %c0 = arith.constant 0 : index
    %c0_1 = arith.constant 0 : index
    %c0_2 = arith.constant 0 : index
    %3 = vector.load %arg2[%c0, %c0_1, %c0_2] : memref<1x4x384xbf16, #tpu.memory_space<vmem>>, vector<1x4x384xbf16>
    %4 = vector.shape_cast %3 : vector<1x4x384xbf16> to vector<4x384xbf16>
    %c0_3 = arith.constant 0 : index
    %c0_4 = arith.constant 0 : index
    %c0_5 = arith.constant 0 : index
    %5 = vector.load %arg3[%c0_3, %c0_4, %c0_5] : memref<1x4x384xbf16, #tpu.memory_space<vmem>>, vector<1x4x384xbf16>
    %6 = vector.shape_cast %5 : vector<1x4x384xbf16> to vector<4x384xbf16>
    %c0_6 = arith.constant 0 : index
    %c0_7 = arith.constant 0 : index
    %7 = vector.load %arg5[%c0_6, %c0_7] : memref<8x1xf32, #tpu.memory_space<vmem>>, vector<8x1xf32>
    %8 = vector.shape_cast %7 : vector<8x1xf32> to vector<8x1xf32>
    %9 = vector.broadcast %8 : vector<8x1xf32> to vector<8x288xf32>
    %c0_8 = arith.constant 0 : index
    %c0_9 = arith.constant 0 : index
    %c0_10 = arith.constant 0 : index
    %10 = vector.load %arg4[%c0_8, %c0_9, %c0_10] : memref<9x8x4xbf16, #tpu.memory_space<vmem>>, vector<1x8x4xbf16>
    %11 = vector.shape_cast %10 : vector<1x8x4xbf16> to vector<8x4xbf16>
    %12 = vector.extract_strided_slice %4 {offsets = [0, 0], sizes = [4, 288], strides = [1, 1]} : vector<4x384xbf16> to vector<4x288xbf16>
    %cst = arith.constant dense<0.000000e+00> : vector<8x288xf32>
    %13 = tpu.matmul %11, %12, %cst {dimension_numbers = #tpu.dot_dimension_numbers<[1], [0], [0], [1], [0, 0, 1, 1], [], []>} : vector<8x4xbf16>, vector<4x288xbf16>, vector<8x288xf32> -> vector<8x288xf32>
    %14 = arith.addf %9, %13 : vector<8x288xf32>
    %15 = vector.extract_strided_slice %6 {offsets = [0, 0], sizes = [4, 288], strides = [1, 1]} : vector<4x384xbf16> to vector<4x288xbf16>
    %cst_11 = arith.constant dense<0.000000e+00> : vector<8x288xf32>
    %16 = tpu.matmul %11, %15, %cst_11 {dimension_numbers = #tpu.dot_dimension_numbers<[1], [0], [0], [1], [0, 0, 1, 1], [], []>} : vector<8x4xbf16>, vector<4x288xbf16>, vector<8x288xf32> -> vector<8x288xf32>
    %17 = arith.addf %9, %16 : vector<8x288xf32>
    %c1 = arith.constant 1 : index
    %c0_12 = arith.constant 0 : index
    %c0_13 = arith.constant 0 : index
    %18 = vector.load %arg4[%c1, %c0_12, %c0_13] : memref<9x8x4xbf16, #tpu.memory_space<vmem>>, vector<1x8x4xbf16>
    %19 = vector.shape_cast %18 : vector<1x8x4xbf16> to vector<8x4xbf16>
    %20 = vector.extract_strided_slice %4 {offsets = [0, 1], sizes = [4, 288], strides = [1, 1]} : vector<4x384xbf16> to vector<4x288xbf16>
    %cst_14 = arith.constant dense<0.000000e+00> : vector<8x288xf32>
    %21 = tpu.matmul %19, %20, %cst_14 {dimension_numbers = #tpu.dot_dimension_numbers<[1], [0], [0], [1], [0, 0, 1, 1], [], []>} : vector<8x4xbf16>, vector<4x288xbf16>, vector<8x288xf32> -> vector<8x288xf32>
    %22 = arith.addf %14, %21 : vector<8x288xf32>
    %23 = vector.extract_strided_slice %6 {offsets = [0, 1], sizes = [4, 288], strides = [1, 1]} : vector<4x384xbf16> to vector<4x288xbf16>
    %cst_15 = arith.constant dense<0.000000e+00> : vector<8x288xf32>
    %24 = tpu.matmul %19, %23, %cst_15 {dimension_numbers = #tpu.dot_dimension_numbers<[1], [0], [0], [1], [0, 0, 1, 1], [], []>} : vector<8x4xbf16>, vector<4x288xbf16>, vector<8x288xf32> -> vector<8x288xf32>
    %25 = arith.addf %17, %24 : vector<8x288xf32>
    %c2 = arith.constant 2 : index
    %c0_16 = arith.constant 0 : index
    %c0_17 = arith.constant 0 : index
    %26 = vector.load %arg4[%c2, %c0_16, %c0_17] : memref<9x8x4xbf16, #tpu.memory_space<vmem>>, vector<1x8x4xbf16>
    %27 = vector.shape_cast %26 : vector<1x8x4xbf16> to vector<8x4xbf16>
    %28 = vector.extract_strided_slice %4 {offsets = [0, 2], sizes = [4, 288], strides = [1, 1]} : vector<4x384xbf16> to vector<4x288xbf16>
    %cst_18 = arith.constant dense<0.000000e+00> : vector<8x288xf32>
    %29 = tpu.matmul %27, %28, %cst_18 {dimension_numbers = #tpu.dot_dimension_numbers<[1], [0], [0], [1], [0, 0, 1, 1], [], []>} : vector<8x4xbf16>, vector<4x288xbf16>, vector<8x288xf32> -> vector<8x288xf32>
    %30 = arith.addf %22, %29 : vector<8x288xf32>
    %31 = vector.extract_strided_slice %6 {offsets = [0, 2], sizes = [4, 288], strides = [1, 1]} : vector<4x384xbf16> to vector<4x288xbf16>
    %cst_19 = arith.constant dense<0.000000e+00> : vector<8x288xf32>
    %32 = tpu.matmul %27, %31, %cst_19 {dimension_numbers = #tpu.dot_dimension_numbers<[1], [0], [0], [1], [0, 0, 1, 1], [], []>} : vector<8x4xbf16>, vector<4x288xbf16>, vector<8x288xf32> -> vector<8x288xf32>
    %33 = arith.addf %25, %32 : vector<8x288xf32>
    %c3 = arith.constant 3 : index
    %c0_20 = arith.constant 0 : index
    %c0_21 = arith.constant 0 : index
    %34 = vector.load %arg4[%c3, %c0_20, %c0_21] : memref<9x8x4xbf16, #tpu.memory_space<vmem>>, vector<1x8x4xbf16>
    %35 = vector.shape_cast %34 : vector<1x8x4xbf16> to vector<8x4xbf16>
    %36 = vector.extract_strided_slice %4 {offsets = [0, 18], sizes = [4, 288], strides = [1, 1]} : vector<4x384xbf16> to vector<4x288xbf16>
    %cst_22 = arith.constant dense<0.000000e+00> : vector<8x288xf32>
    %37 = tpu.matmul %35, %36, %cst_22 {dimension_numbers = #tpu.dot_dimension_numbers<[1], [0], [0], [1], [0, 0, 1, 1], [], []>} : vector<8x4xbf16>, vector<4x288xbf16>, vector<8x288xf32> -> vector<8x288xf32>
    %38 = arith.addf %30, %37 : vector<8x288xf32>
    %39 = vector.extract_strided_slice %6 {offsets = [0, 18], sizes = [4, 288], strides = [1, 1]} : vector<4x384xbf16> to vector<4x288xbf16>
    %cst_23 = arith.constant dense<0.000000e+00> : vector<8x288xf32>
    %40 = tpu.matmul %35, %39, %cst_23 {dimension_numbers = #tpu.dot_dimension_numbers<[1], [0], [0], [1], [0, 0, 1, 1], [], []>} : vector<8x4xbf16>, vector<4x288xbf16>, vector<8x288xf32> -> vector<8x288xf32>
    %41 = arith.addf %33, %40 : vector<8x288xf32>
    %c4 = arith.constant 4 : index
    %c0_24 = arith.constant 0 : index
    %c0_25 = arith.constant 0 : index
    %42 = vector.load %arg4[%c4, %c0_24, %c0_25] : memref<9x8x4xbf16, #tpu.memory_space<vmem>>, vector<1x8x4xbf16>
    %43 = vector.shape_cast %42 : vector<1x8x4xbf16> to vector<8x4xbf16>
    %44 = vector.extract_strided_slice %4 {offsets = [0, 19], sizes = [4, 288], strides = [1, 1]} : vector<4x384xbf16> to vector<4x288xbf16>
    %cst_26 = arith.constant dense<0.000000e+00> : vector<8x288xf32>
    %45 = tpu.matmul %43, %44, %cst_26 {dimension_numbers = #tpu.dot_dimension_numbers<[1], [0], [0], [1], [0, 0, 1, 1], [], []>} : vector<8x4xbf16>, vector<4x288xbf16>, vector<8x288xf32> -> vector<8x288xf32>
    %46 = arith.addf %38, %45 : vector<8x288xf32>
    %47 = vector.extract_strided_slice %6 {offsets = [0, 19], sizes = [4, 288], strides = [1, 1]} : vector<4x384xbf16> to vector<4x288xbf16>
    %cst_27 = arith.constant dense<0.000000e+00> : vector<8x288xf32>
    %48 = tpu.matmul %43, %47, %cst_27 {dimension_numbers = #tpu.dot_dimension_numbers<[1], [0], [0], [1], [0, 0, 1, 1], [], []>} : vector<8x4xbf16>, vector<4x288xbf16>, vector<8x288xf32> -> vector<8x288xf32>
    %49 = arith.addf %41, %48 : vector<8x288xf32>
    %c5 = arith.constant 5 : index
    %c0_28 = arith.constant 0 : index
    %c0_29 = arith.constant 0 : index
    %50 = vector.load %arg4[%c5, %c0_28, %c0_29] : memref<9x8x4xbf16, #tpu.memory_space<vmem>>, vector<1x8x4xbf16>
    %51 = vector.shape_cast %50 : vector<1x8x4xbf16> to vector<8x4xbf16>
    %52 = vector.extract_strided_slice %4 {offsets = [0, 20], sizes = [4, 288], strides = [1, 1]} : vector<4x384xbf16> to vector<4x288xbf16>
    %cst_30 = arith.constant dense<0.000000e+00> : vector<8x288xf32>
    %53 = tpu.matmul %51, %52, %cst_30 {dimension_numbers = #tpu.dot_dimension_numbers<[1], [0], [0], [1], [0, 0, 1, 1], [], []>} : vector<8x4xbf16>, vector<4x288xbf16>, vector<8x288xf32> -> vector<8x288xf32>
    %54 = arith.addf %46, %53 : vector<8x288xf32>
    %55 = vector.extract_strided_slice %6 {offsets = [0, 20], sizes = [4, 288], strides = [1, 1]} : vector<4x384xbf16> to vector<4x288xbf16>
    %cst_31 = arith.constant dense<0.000000e+00> : vector<8x288xf32>
    %56 = tpu.matmul %51, %55, %cst_31 {dimension_numbers = #tpu.dot_dimension_numbers<[1], [0], [0], [1], [0, 0, 1, 1], [], []>} : vector<8x4xbf16>, vector<4x288xbf16>, vector<8x288xf32> -> vector<8x288xf32>
    %57 = arith.addf %49, %56 : vector<8x288xf32>
    %c6 = arith.constant 6 : index
    %c0_32 = arith.constant 0 : index
    %c0_33 = arith.constant 0 : index
    %58 = vector.load %arg4[%c6, %c0_32, %c0_33] : memref<9x8x4xbf16, #tpu.memory_space<vmem>>, vector<1x8x4xbf16>
    %59 = vector.shape_cast %58 : vector<1x8x4xbf16> to vector<8x4xbf16>
    %60 = vector.extract_strided_slice %4 {offsets = [0, 36], sizes = [4, 288], strides = [1, 1]} : vector<4x384xbf16> to vector<4x288xbf16>
    %cst_34 = arith.constant dense<0.000000e+00> : vector<8x288xf32>
    %61 = tpu.matmul %59, %60, %cst_34 {dimension_numbers = #tpu.dot_dimension_numbers<[1], [0], [0], [1], [0, 0, 1, 1], [], []>} : vector<8x4xbf16>, vector<4x288xbf16>, vector<8x288xf32> -> vector<8x288xf32>
    %62 = arith.addf %54, %61 : vector<8x288xf32>
    %63 = vector.extract_strided_slice %6 {offsets = [0, 36], sizes = [4, 288], strides = [1, 1]} : vector<4x384xbf16> to vector<4x288xbf16>
    %cst_35 = arith.constant dense<0.000000e+00> : vector<8x288xf32>
    %64 = tpu.matmul %59, %63, %cst_35 {dimension_numbers = #tpu.dot_dimension_numbers<[1], [0], [0], [1], [0, 0, 1, 1], [], []>} : vector<8x4xbf16>, vector<4x288xbf16>, vector<8x288xf32> -> vector<8x288xf32>
    %65 = arith.addf %57, %64 : vector<8x288xf32>
    %c7 = arith.constant 7 : index
    %c0_36 = arith.constant 0 : index
    %c0_37 = arith.constant 0 : index
    %66 = vector.load %arg4[%c7, %c0_36, %c0_37] : memref<9x8x4xbf16, #tpu.memory_space<vmem>>, vector<1x8x4xbf16>
    %67 = vector.shape_cast %66 : vector<1x8x4xbf16> to vector<8x4xbf16>
    %68 = vector.extract_strided_slice %4 {offsets = [0, 37], sizes = [4, 288], strides = [1, 1]} : vector<4x384xbf16> to vector<4x288xbf16>
    %cst_38 = arith.constant dense<0.000000e+00> : vector<8x288xf32>
    %69 = tpu.matmul %67, %68, %cst_38 {dimension_numbers = #tpu.dot_dimension_numbers<[1], [0], [0], [1], [0, 0, 1, 1], [], []>} : vector<8x4xbf16>, vector<4x288xbf16>, vector<8x288xf32> -> vector<8x288xf32>
    %70 = arith.addf %62, %69 : vector<8x288xf32>
    %71 = vector.extract_strided_slice %6 {offsets = [0, 37], sizes = [4, 288], strides = [1, 1]} : vector<4x384xbf16> to vector<4x288xbf16>
    %cst_39 = arith.constant dense<0.000000e+00> : vector<8x288xf32>
    %72 = tpu.matmul %67, %71, %cst_39 {dimension_numbers = #tpu.dot_dimension_numbers<[1], [0], [0], [1], [0, 0, 1, 1], [], []>} : vector<8x4xbf16>, vector<4x288xbf16>, vector<8x288xf32> -> vector<8x288xf32>
    %73 = arith.addf %65, %72 : vector<8x288xf32>
    %c8 = arith.constant 8 : index
    %c0_40 = arith.constant 0 : index
    %c0_41 = arith.constant 0 : index
    %74 = vector.load %arg4[%c8, %c0_40, %c0_41] : memref<9x8x4xbf16, #tpu.memory_space<vmem>>, vector<1x8x4xbf16>
    %75 = vector.shape_cast %74 : vector<1x8x4xbf16> to vector<8x4xbf16>
    %76 = vector.extract_strided_slice %4 {offsets = [0, 38], sizes = [4, 288], strides = [1, 1]} : vector<4x384xbf16> to vector<4x288xbf16>
    %cst_42 = arith.constant dense<0.000000e+00> : vector<8x288xf32>
    %77 = tpu.matmul %75, %76, %cst_42 {dimension_numbers = #tpu.dot_dimension_numbers<[1], [0], [0], [1], [0, 0, 1, 1], [], []>} : vector<8x4xbf16>, vector<4x288xbf16>, vector<8x288xf32> -> vector<8x288xf32>
    %78 = arith.addf %70, %77 : vector<8x288xf32>
    %79 = vector.extract_strided_slice %6 {offsets = [0, 38], sizes = [4, 288], strides = [1, 1]} : vector<4x384xbf16> to vector<4x288xbf16>
    %cst_43 = arith.constant dense<0.000000e+00> : vector<8x288xf32>
    %80 = tpu.matmul %75, %79, %cst_43 {dimension_numbers = #tpu.dot_dimension_numbers<[1], [0], [0], [1], [0, 0, 1, 1], [], []>} : vector<8x4xbf16>, vector<4x288xbf16>, vector<8x288xf32> -> vector<8x288xf32>
    %81 = arith.addf %73, %80 : vector<8x288xf32>
    %cst_44 = arith.constant 0.000000e+00 : f32
    %82 = vector.broadcast %cst_44 : f32 to vector<8x288xf32>
    %83 = arith.maximumf %78, %82 : vector<8x288xf32>
    %cst_45 = arith.constant 0.000000e+00 : f32
    %84 = vector.broadcast %cst_45 : f32 to vector<8x288xf32>
    %85 = arith.maximumf %81, %84 : vector<8x288xf32>
    %86 = arith.subf %83, %85 : vector<8x288xf32>
    %87 = math.absf %86 : vector<8x288xf32>
    %c0_46 = arith.constant 0 : index
    %c0_47 = arith.constant 0 : index
    %88 = vector.load %arg6[%c0_46, %c0_47] : memref<1x288xf32, #tpu.memory_space<vmem>>, vector<1x288xf32>
    %89 = vector.broadcast %88 : vector<1x288xf32> to vector<8x288xf32>
    %90 = arith.mulf %87, %89 : vector<8x288xf32>
    %c0_48 = arith.constant 0 : index
    %c0_49 = arith.constant 0 : index
    %c0_50 = arith.constant 0 : index
    %91 = vector.load %arg7[%c0_48, %c0_49, %c0_50] : memref<1x1x1xf32, #tpu.memory_space<vmem>>, vector<1x1x1xf32>
    %92 = vector.shape_cast %90 : vector<8x288xf32> to vector<1x8x288xf32>
    %cst_51 = arith.constant dense<0.000000e+00> : vector<1xf32>
    %93 = vector.multi_reduction <add>, %92, %cst_51 [1, 2] : vector<1x8x288xf32> to vector<1xf32>
    %94 = vector.shape_cast %93 : vector<1xf32> to vector<1x1x1xf32>
    %95 = vector.extract %94[0, 0, 0] : f32 from vector<1x1x1xf32>
    %96 = vector.broadcast %95 : f32 to vector<1x1x1xf32>
    %97 = arith.addf %91, %96 : vector<1x1x1xf32>
    %c0_52 = arith.constant 0 : index
    %c0_53 = arith.constant 0 : index
    %c0_54 = arith.constant 0 : index
    %98 = vector.load %arg7[%c0_52, %c0_53, %c0_54] : memref<1x1x1xf32, #tpu.memory_space<vmem>>, vector<1x1x1xf32>
    tpu.vector_store %arg7[%c0_52, %c0_53, %c0_54], %97 {strides = array<i32>} : memref<1x1x1xf32, #tpu.memory_space<vmem>>, vector<1x1x1xf32>,
    return
  }
  func.func @transform_0(%arg0: i32, %arg1: i32) -> (i32, i32, i32) {
    %c1_i32 = arith.constant 1 : i32
    %0 = arith.muli %arg0, %c1_i32 : i32
    %1 = arith.addi %0, %arg1 : i32
    %c0_i32 = arith.constant 0 : i32
    %c0_i32_0 = arith.constant 0 : i32
    %c0_i32_1 = arith.constant 0 : i32
    return %1, %c0_i32, %c0_i32_0 : i32, i32, i32
  }
  func.func @transform_1(%arg0: i32, %arg1: i32) -> (i32, i32, i32) {
    %c1_i32 = arith.constant 1 : i32
    %0 = arith.muli %arg0, %c1_i32 : i32
    %1 = arith.addi %0, %arg1 : i32
    %c0_i32 = arith.constant 0 : i32
    %c0_i32_0 = arith.constant 0 : i32
    %c0_i32_1 = arith.constant 0 : i32
    return %1, %c0_i32, %c0_i32_0 : i32, i32, i32
  }
  func.func @transform_2(%arg0: i32, %arg1: i32) -> (i32, i32, i32) {
    %c0_i32 = arith.constant 0 : i32
    %c0_i32_0 = arith.constant 0 : i32
    %c0_i32_1 = arith.constant 0 : i32
    %c0_i32_2 = arith.constant 0 : i32
    return %c0_i32, %c0_i32_0, %c0_i32_1 : i32, i32, i32
  }
  func.func @transform_3(%arg0: i32, %arg1: i32) -> (i32, i32) {
    %c0_i32 = arith.constant 0 : i32
    %c0_i32_0 = arith.constant 0 : i32
    %c0_i32_1 = arith.constant 0 : i32
    return %c0_i32, %c0_i32_0 : i32, i32
  }
  func.func @transform_4(%arg0: i32, %arg1: i32) -> (i32, i32) {
    %c0_i32 = arith.constant 0 : i32
    %c0_i32_0 = arith.constant 0 : i32
    %c0_i32_1 = arith.constant 0 : i32
    return %c0_i32, %c0_i32_0 : i32, i32
  }
  func.func @transform_5(%arg0: i32, %arg1: i32) -> (i32, i32, i32) {
    %c0_i32 = arith.constant 0 : i32
    %c0_i32_0 = arith.constant 0 : i32
    %c0_i32_1 = arith.constant 0 : i32
    return %arg0, %c0_i32, %c0_i32_0 : i32, i32, i32
  }
}

</mosaic_0001>

<bundles_post_ra>
// kernel: detection_loss.1
= control target key start
LH: loop header
LB: loop body
LE: loop exit
PB: predicated region body
PF: predicated region fallthrough
CT: control target
= control target key end

     0   :  { %s2612_s18 = smov 0   ;;  %s2614_s19 = smov 0   ;;  %s2996_s0 = inlined_call_operand.vmem [shape: bf16[2,4,384], index: 0, kind: input, shape index: {}]   ;;  %s2997_s1 = inlined_call_operand.vmem [shape: bf16[2,4,384], index: 1, kind: input, shape index: {}]   ;;  %s2998_s2 = inlined_call_operand.vmem [shape: bf16[9,8,4], index: 2, kind: input, shape index: {}]   ;;  %s2999_s3 = inlined_call_operand.vmem [shape: f32[8,1], index: 3, kind: input, shape index: {}]   ;;  %s3000_s4 = inlined_call_operand.vmem [shape: f32[1,288], index: 4, kind: input, shape index: {}]   ;;  %s3001_s5 = inlined_call_operand.vmem [shape: f32[2,1,1], index: 5, kind: output, shape index: {}]  }
   0x1   :  { %s2616_s20 = smov 0  }
   0x2 LB: > { %s27_s21 = sadd.s32 1, %s2564_s19  ;;  %p2293_p0 = scmp.ge.s32.totalorder %s2568_s20, 1  ;;  %s2568_s20 = sphi %s2616_s20, %s15_s20   ;;  %s2564_s19 = sphi %s2614_s19, %s3003_s19   ;;  %s2560_s18 = sphi %s2612_s18, %s3002_s18  }
   0x3   : > { %p29_p1 = scmp.ge.s32.totalorder %s27_s21, 2  ;;  %p217_p2 = scmp.lt.s32.totalorder %s2568_s20, 3 }
   0x5   : > { %s3005_s21 = smov (%p29_p1, %s27_s21), 0  ;;  %p218_p3 = pnand %p2293_p0, %p217_p2 }
   0x6   : > { %p251_p4 = scmp.lt.s32.totalorder (!%p218_p3), %s2560_s18, 1  ;;  %s2574_s29 = smov (!%p218_p3), 127  }
   0x7   : > { %221 = sbr.rel (%p218_p3) target bundleno = 678 (0x2a6), region = 40  ;;  %s2575_s7 = smov (!%p218_p3), 126  }
   0x8   : > { %s2576_s8 = smov (!%p218_p3), 110   ;;  %s2577_s9 = smov (!%p218_p3), 109  }
   0x9   : > { %s2578_s10 = smov (!%p218_p3), 108   ;;  %s2579_s11 = smov (!%p218_p3), 92  }
   0xa   : > { %s2580_s12 = smov (!%p218_p3), 91   ;;  %s2581_s13 = smov (!%p218_p3), 90  }
   0xc   : > { %v288_v0 = vlaneseq  ;;  %v2570_v1 = vmov 1983009808   ;;  %v2571_v3 = vmov 0.0   ;;  %s3007_s18 = smov (!%p251_p4, %s2560_s18), 1  ;;  %vm2572_vm0 = vmmov 0   ;;  %v276_v23 = vld [vmem:[%s2999_s3] sm:$0xff] }
   0xd   : > { %v286_v2 = vunpack.c.l.s4 %v2570_v1  ;;  %2396 = vmatprep.subr.bf16.mxu1 %v2571_v3  ;;  %2398 = vmatprep.mubr.msk.bf16.mxu1 %vm2572_vm0, %v2571_v3  ;;  %v2573_v6 = vmov 0   ;;  %s2504_s22 = smul.u32 6, %s3007_s18  ;;  %vm304_vm1 = vcmask 1041408   ;;  %v282_v20 = vld [vmem:[%s2998_s2] sm:$0xf]  ;;  %vm300_vm2 = vcmask 31744   ;;  %s266_s15 = scalar_lea.vmem %s3001_s5, %s3007_s18 }
   0xe   : > { %v2633_v4 = vshrl.u32 %v288_v0, 7  ;;  %346 = vmatprep.mubr.bf16.mxu0 %v2573_v6  ;;  %2543 = vset.pattern.permute.xlu0 %v2573_v6  ;;  %vm516_vm3 = vcmask 1039360   ;;  %v2302_v28 = vld [vmem:[%s2998_s2 + $0x4] sm:$0xf]  ;;  %vm724_vm4 = vcmask 1031168   ;;  %vm932_vm5 = vcmask 900096  }
   0xf   : > { %v287_v5 = vunpack.c.0.s8 %v286_v2  ;;  %s255_s25 = scalar_lea.vmem %s2996_s0, %s2504_s22  ;;  %s262_s28 = scalar_lea.vmem %s2997_s1, %s2504_s22  ;;  %v2309_v47 = vld [vmem:[%s2998_s2 + $0x8] sm:$0xf]  ;;  %v2316_v1 = vld [vmem:[%s2998_s2 + $0xc] sm:$0xf]  ;;  %vm1140_vm6 = vcmask 891904   ;;  %vm1348_vm7 = vcmask 883712  }
  0x10   : > { %v274_v8 = vld [vmem:[%s255_s25] sm:$0x3f]  ;;  %vm1556_vm8 = vcmask 752640   ;;  %vm1764_vm9 = vcmask 744448   ;;  %vm1972_vm10 = vcmask 736256   ;;  %vm2206_vm11 = vcmask 261120  }
  0x11   : > { %v290_v7 = vsub.s32 %v287_v5, %v2633_v4  ;;  %v275_v9 = vld [vmem:[%s262_s28] sm:$0x3f]  ;;  %v284_v11 = vcombine.high %v274_v8, %v274_v8  ;;  %vm272_vm12 = vcmask 0  }
  0x12   : > { %v399_v12 = vcombine.high %v275_v9, %v275_v9  ;;  %273 = vst.msk [vmem:[%s266_s15] sm:$0x1] %vm272_vm12, %v2571_v3 }
  0x13   : > { %v2647_v10 = vrot.slane %v274_v8, %v290_v7  ;;  %v2649_v13 = vrot.slane %v275_v9, %v290_v7  ;;  %v2652_v14 = vrot.slane %v284_v11, %v290_v7 }
  0x14   : > { %v2661_v17 = vrot.slane %v399_v12, %v290_v7 }
  0x15   : > { %510 = vrot.lane.b32.xlu0 %v2647_v10, %s2574_s29  ;;  %v2656_v15 = vcombine.high %v2647_v10, %v2647_v10  ;;  %v306_v16 = vsel %vm304_vm1, %v2647_v10, 0  ;;  %514 = vrot.lane.b32.xlu1 %v2652_v14, %s2574_s29  ;;  %v312_v18 = vsel %vm304_vm1, %v2652_v14, 0  ;;  %v2669_v19 = vcombine.high %v2649_v13, %v2649_v13 }
  0x16   : > { %2397 = vmatpush3.bf16.msra.mxu1 %v312_v18  ;;  %v422_v21 = vsel %vm304_vm1, %v2661_v17, 0  ;;  %v416_v22 = vsel %vm304_vm1, %v2649_v13, 0 }
  0x17   : > { %2296 = vmatprep.subr.msk.bf16.mxu0 %vm304_vm1, %v2656_v15  ;;  %2402 = vmatprep.subr.bf16.mxu1 %v2571_v3 }
  0x18   : > { %329 = vmatpush1.bf16.msra.mxu0 %v306_v16 }
  0x19   : > { %512 = vrot.lane.b32.xlu0 %v2656_v15, %s2574_s29  ;;  %2299 = vmatprep.subr.msk.bf16.mxu0 %vm304_vm1, %v2669_v19 }
  0x1a   : > { %615 = vrot.lane.b32.xlu1 %v2649_v13, %s2574_s29  ;;  %2399 = vmatmul.mubr.msk.bf16.vlgmr.msra.gmra.mxu1 %vm300_vm2, %v282_v20 }
  0x1b   : > { %2297 = vmatmul.mubr.msk.bf16.vlgmr.msra.gmra.mxu0 %vm300_vm2, %v282_v20  ;;  %2403 = vmatpush3.bf16.msra.mxu1 %v422_v21  ;;  %v2323_v21 = vld [vmem:[%s2998_s2 + $0x10] sm:$0xf] }
  0x1c   : > { %439 = vmatpush1.bf16.msra.mxu0 %v416_v22  ;;  %2404 = vmatprep.mubr.msk.bf16.mxu1 %vm2572_vm0, %v2571_v3 }
  0x1d   : > { %617 = vrot.lane.b32.xlu0 %v2669_v19, %s2574_s29  ;;  %456 = vmatprep.mubr.bf16.mxu0 %v2573_v6 }
  0x1e   : > { %619 = vrot.lane.b32.xlu1 %v2661_v17, %s2574_s29  ;;  %2408 = vmatprep.subr.bf16.mxu1 %v2571_v3 }
  0x21   : > { %718 = vrot.lane.b32.xlu0 %v2647_v10, %s2575_s7 }
  0x22   : > { %720 = vrot.lane.b32.xlu1 %v2656_v15, %s2575_s7  ;;  %2405 = vmatmul.mubr.msk.bf16.vlgmr.msra.gmra.mxu1 %vm300_vm2, %v282_v20 }
  0x23   : > { %2300 = vmatmul.mubr.msk.bf16.vlgmr.msra.gmra.mxu0 %vm300_vm2, %v282_v20  ;;  %2410 = vmatprep.mubr.msk.bf16.mxu1 %vm2572_vm0, %v2571_v3 }
  0x24   : > { %563 = vmatprep.mubr.bf16.mxu0 %v2573_v6 }
  0x25   : > { %722 = vrot.lane.b32.xlu0 %v2652_v14, %s2575_s7 }
  0x26   : > { %823 = vrot.lane.b32.xlu1 %v2649_v13, %s2575_s7 }
  0x29   : > { %825 = vrot.lane.b32.xlu0 %v2669_v19, %s2575_s7 }
  0x2a   : > { %827 = vrot.lane.b32.xlu1 %v2661_v17, %s2575_s7 }
  0x2d   : > { %926 = vrot.lane.b32.xlu0 %v2647_v10, %s2576_s8 }
  0x2e   : > { %928 = vrot.lane.b32.xlu1 %v2656_v15, %s2576_s8 }
  0x31   : > { %930 = vrot.lane.b32.xlu0 %v2652_v14, %s2576_s8 }
  0x32   : > { %1031 = vrot.lane.b32.xlu1 %v2649_v13, %s2576_s8 }
  0x35   : > { %1033 = vrot.lane.b32.xlu0 %v2669_v19, %s2576_s8 }
  0x36   : > { %1035 = vrot.lane.b32.xlu1 %v2661_v17, %s2576_s8 }
  0x39   : > { %1134 = vrot.lane.b32.xlu0 %v2647_v10, %s2577_s9 }
  0x3a   : > { %1136 = vrot.lane.b32.xlu1 %v2656_v15, %s2577_s9 }
  0x3d   : > { %1138 = vrot.lane.b32.xlu0 %v2652_v14, %s2577_s9 }
  0x3e   : > { %1239 = vrot.lane.b32.xlu1 %v2649_v13, %s2577_s9 }
  0x41   : > { %1241 = vrot.lane.b32.xlu0 %v2669_v19, %s2577_s9 }
  0x42   : > { %1243 = vrot.lane.b32.xlu1 %v2661_v17, %s2577_s9 }
  0x45   : > { %1342 = vrot.lane.b32.xlu0 %v2647_v10, %s2578_s10 }
  0x46   : > { %1344 = vrot.lane.b32.xlu1 %v2656_v15, %s2578_s10 }
  0x49   : > { %1346 = vrot.lane.b32.xlu0 %v2652_v14, %s2578_s10 }
  0x4a   : > { %1447 = vrot.lane.b32.xlu1 %v2649_v13, %s2578_s10 }
  0x4d   : > { %1449 = vrot.lane.b32.xlu0 %v2669_v19, %s2578_s10 }
  0x4e   : > { %1451 = vrot.lane.b32.xlu1 %v2661_v17, %s2578_s10 }
  0x51   : > { %1550 = vrot.lane.b32.xlu0 %v2647_v10, %s2579_s11 }
  0x52   : > { %1552 = vrot.lane.b32.xlu1 %v2656_v15, %s2579_s11 }
  0x55   : > { %1554 = vrot.lane.b32.xlu0 %v2652_v14, %s2579_s11 }
  0x56   : > { %1655 = vrot.lane.b32.xlu1 %v2649_v13, %s2579_s11 }
  0x59   : > { %1657 = vrot.lane.b32.xlu0 %v2669_v19, %s2579_s11 }
  0x5a   : > { %1659 = vrot.lane.b32.xlu1 %v2661_v17, %s2579_s11 }
  0x5d   : > { %1758 = vrot.lane.b32.xlu0 %v2647_v10, %s2580_s12 }
  0x5e   : > { %1760 = vrot.lane.b32.xlu1 %v2656_v15, %s2580_s12 }
  0x61   : > { %1762 = vrot.lane.b32.xlu0 %v2652_v14, %s2580_s12 }
  0x62   : > { %1863 = vrot.lane.b32.xlu1 %v2649_v13, %s2580_s12 }
  0x65   : > { %1865 = vrot.lane.b32.xlu0 %v2669_v19, %s2580_s12 }
  0x66   : > { %1867 = vrot.lane.b32.xlu1 %v2661_v17, %s2580_s12 }
  0x69   : > { %1966 = vrot.lane.b32.xlu0 %v2647_v10, %s2581_s13 }
  0x6a   : > { %1968 = vrot.lane.b32.xlu1 %v2656_v15, %s2581_s13 }
  0x6d   : > { %1970 = vrot.lane.b32.xlu0 %v2652_v14, %s2581_s13 }
  0x6e   : > { %2071 = vrot.lane.b32.xlu1 %v2649_v13, %s2581_s13 }
  0x71   : > { %2073 = vrot.lane.b32.xlu0 %v2669_v19, %s2581_s13 }
  0x72   : > { %2075 = vrot.lane.b32.xlu1 %v2661_v17, %s2581_s13 }
  0x75   : > { %279 = vperm.xlu0 %2543, %v276_v23  }
  0x87   : > { %v511_v24 = vpop.permute.xlu0 %510  ;;  %v515_v25 = vpop.permute.xlu1 %514 }
  0x88   : > { %v529_v26 = vsel %vm304_vm1, %v515_v25, 0 }
  0x89   : > { %2409 = vmatpush3.bf16.msra.mxu1 %v529_v26 }
  0x8a   : > { %2414 = vmatprep.subr.bf16.mxu1 %v2571_v3 }
  0x8b   : > { %v513_v27 = vpop.permute.xlu0 %512 }
  0x8c   : > { %v517_v29 = vsel %vm516_vm3, %v511_v24, %v513_v27  ;;  %v518_v30 = vsel %vm516_vm3, %v513_v27, %v515_v25  ;;  %v616_v32 = vpop.permute.xlu1 %615  ;;  %2411 = vmatmul.mubr.msk.bf16.vlgmr.msra.gmra.mxu1 %vm300_vm2, %v2302_v28 }
  0x8d   : > { %v523_v31 = vsel %vm304_vm1, %v517_v29, 0  ;;  %2303 = vmatprep.subr.msk.bf16.mxu0 %vm304_vm1, %v518_v30  ;;  %2416 = vmatprep.mubr.msk.bf16.mxu1 %vm2572_vm0, %v2571_v3 }
  0x8e   : > { %546 = vmatpush1.bf16.msra.mxu0 %v523_v31 }
  0x8f   : > { %v618_v33 = vpop.permute.xlu0 %617 }
  0x90   : > { %v621_v34 = vsel %vm516_vm3, %v616_v32, %v618_v33  ;;  %v620_v35 = vpop.permute.xlu1 %619 }
  0x91   : > { %2304 = vmatmul.mubr.msk.bf16.vlgmr.msra.gmra.mxu0 %vm300_vm2, %v2302_v28  ;;  %v622_v36 = vsel %vm516_vm3, %v618_v33, %v620_v35  ;;  %v630_v37 = vsel %vm304_vm1, %v620_v35, 0  ;;  %v624_v38 = vsel %vm304_vm1, %v621_v34, 0 }
  0x92   : > { %664 = vmatprep.mubr.bf16.mxu0 %v2573_v6  ;;  %2306 = vmatprep.subr.msk.bf16.mxu0 %vm304_vm1, %v622_v36  ;;  %v2330_v36 = vld [vmem:[%s2998_s2 + $0x14] sm:$0xf] }
  0x93   : > { %v719_v39 = vpop.permute.xlu0 %718  ;;  %2415 = vmatpush3.bf16.msra.mxu1 %v630_v37  ;;  %647 = vmatpush1.bf16.msra.mxu0 %v624_v38 }
  0x94   : > { %2420 = vmatprep.subr.bf16.mxu1 %v2571_v3  ;;  %v721_v40 = vpop.permute.xlu1 %720 }
  0x95   : > { %v725_v41 = vsel %vm724_vm4, %v719_v39, %v721_v40 }
  0x96   : > { %2417 = vmatmul.mubr.msk.bf16.vlgmr.msra.gmra.mxu1 %vm300_vm2, %v2302_v28  ;;  %v731_v43 = vsel %vm304_vm1, %v725_v41, 0 }
  0x97   : > { %v723_v42 = vpop.permute.xlu0 %722  ;;  %2422 = vmatprep.mubr.msk.bf16.mxu1 %vm2572_vm0, %v2571_v3 }
  0x98   : > { %v737_v44 = vsel %vm304_vm1, %v723_v42, 0  ;;  %v726_v45 = vsel %vm724_vm4, %v721_v40, %v723_v42  ;;  %v824_v46 = vpop.permute.xlu1 %823 }
  0x99   : > { %2307 = vmatmul.mubr.msk.bf16.vlgmr.msra.gmra.mxu0 %vm300_vm2, %v2302_v28  ;;  %2310 = vmatprep.subr.msk.bf16.mxu0 %vm304_vm1, %v726_v45 }
  0x9a   : > { %754 = vmatpush1.bf16.msra.mxu0 %v731_v43  ;;  %2421 = vmatpush3.bf16.msra.mxu1 %v737_v44 }
  0x9b   : > { %v826_v48 = vpop.permute.xlu0 %825  ;;  %771 = vmatprep.mubr.bf16.mxu0 %v2573_v6  ;;  %2426 = vmatprep.subr.bf16.mxu1 %v2571_v3 }
  0x9c   : > { %v829_v49 = vsel %vm724_vm4, %v824_v46, %v826_v48  ;;  %v828_v50 = vpop.permute.xlu1 %827 }
  0x9d   : > { %v830_v51 = vsel %vm724_vm4, %v826_v48, %v828_v50  ;;  %v838_v52 = vsel %vm304_vm1, %v828_v50, 0  ;;  %v832_v53 = vsel %vm304_vm1, %v829_v49, 0 }
  0x9e   : > { %2423 = vmatmul.mubr.msk.bf16.vlgmr.msra.gmra.mxu1 %vm300_vm2, %v2309_v47  ;;  %2313 = vmatprep.subr.msk.bf16.mxu0 %vm304_vm1, %v830_v51  ;;  %v2337_v51 = vld [vmem:[%s2998_s2 + $0x18] sm:$0xf] }
  0x9f   : > { %v927_v54 = vpop.permute.xlu0 %926  ;;  %2427 = vmatpush3.bf16.msra.mxu1 %v838_v52  ;;  %2428 = vmatprep.mubr.msk.bf16.mxu1 %vm2572_vm0, %v2571_v3 }
  0xa0   : > { %2432 = vmatprep.subr.bf16.mxu1 %v2571_v3  ;;  %v929_v55 = vpop.permute.xlu1 %928 }
  0xa1   : > { %2311 = vmatmul.mubr.msk.bf16.vlgmr.msra.gmra.mxu0 %vm300_vm2, %v2309_v47  ;;  %v933_v58 = vsel %vm932_vm5, %v927_v54, %v929_v55 }
  0xa2   : > { %855 = vmatpush1.bf16.msra.mxu0 %v832_v53  ;;  %872 = vmatprep.mubr.bf16.mxu0 %v2573_v6  ;;  %v939_v61 = vsel %vm304_vm1, %v933_v58, 0 }
  0xa3   : > { %v931_v56 = vpop.permute.xlu0 %930 }
  0xa4   : > { %v945_v57 = vsel %vm304_vm1, %v931_v56, 0  ;;  %v934_v59 = vsel %vm932_vm5, %v929_v55, %v931_v56  ;;  %v1032_v60 = vpop.permute.xlu1 %1031 }
  0xa5   : > { %2317 = vmatprep.subr.msk.bf16.mxu0 %vm304_vm1, %v934_v59 }
  0xa6   : > { %2429 = vmatmul.mubr.msk.bf16.vlgmr.msra.gmra.mxu1 %vm300_vm2, %v2309_v47 }
  0xa7   : > { %2433 = vmatpush3.bf16.msra.mxu1 %v945_v57  ;;  %2434 = vmatprep.mubr.msk.bf16.mxu1 %vm2572_vm0, %v2571_v3  ;;  %v1034_v62 = vpop.permute.xlu0 %1033 }
  0xa8   : > { %2438 = vmatprep.subr.bf16.mxu1 %v2571_v3  ;;  %v1036_v63 = vpop.permute.xlu1 %1035  ;;  %v1037_v5 = vsel %vm932_vm5, %v1032_v60, %v1034_v62 }
  0xa9   : > { %2314 = vmatmul.mubr.msk.bf16.vlgmr.msra.gmra.mxu0 %vm300_vm2, %v2309_v47  ;;  %v1038_v0 = vsel %vm932_vm5, %v1034_v62, %v1036_v63  ;;  %v1046_v7 = vsel %vm304_vm1, %v1036_v63, 0  ;;  %v1040_v9 = vsel %vm304_vm1, %v1037_v5, 0 }
  0xaa   : > { %962 = vmatpush1.bf16.msra.mxu0 %v939_v61  ;;  %979 = vmatprep.mubr.bf16.mxu0 %v2573_v6 }
  0xab   : > { %2320 = vmatprep.subr.msk.bf16.mxu0 %vm304_vm1, %v1038_v0  ;;  %v1135_v2 = vpop.permute.xlu0 %1134 }
  0xac   : > { %v1137_v8 = vpop.permute.xlu1 %1136 }
  0xad   : > { %v1141_v15 = vsel %vm1140_vm6, %v1135_v2, %v1137_v8 }
  0xae   : > { %2435 = vmatmul.mubr.msk.bf16.vlgmr.msra.gmra.mxu1 %vm300_vm2, %v2316_v1  ;;  %v1147_v17 = vsel %vm304_vm1, %v1141_v15, 0 }
  0xaf   : > { %2439 = vmatpush3.bf16.msra.mxu1 %v1046_v7  ;;  %2440 = vmatprep.mubr.msk.bf16.mxu1 %vm2572_vm0, %v2571_v3  ;;  %v1139_v10 = vpop.permute.xlu0 %1138 }
  0xb0   : > { %v1142_v11 = vsel %vm1140_vm6, %v1137_v8, %v1139_v10  ;;  %2444 = vmatprep.subr.bf16.mxu1 %v2571_v3  ;;  %v1240_v12 = vpop.permute.xlu1 %1239  ;;  %v1153_v14 = vsel %vm304_vm1, %v1139_v10, 0 }
  0xb1   : > { %2318 = vmatmul.mubr.msk.bf16.vlgmr.msra.gmra.mxu0 %vm300_vm2, %v2316_v1 }
  0xb2   : > { %1063 = vmatpush1.bf16.msra.mxu0 %v1040_v9  ;;  %1080 = vmatprep.mubr.bf16.mxu0 %v2573_v6 }
  0xb3   : > { %2324 = vmatprep.subr.msk.bf16.mxu0 %vm304_vm1, %v1142_v11  ;;  %v1242_v13 = vpop.permute.xlu0 %1241 }
  0xb4   : > { %v1244_v16 = vpop.permute.xlu1 %1243  ;;  %v1245_v22 = vsel %vm1140_vm6, %v1240_v12, %v1242_v13 }
  0xb5   : > { %v1246_v19 = vsel %vm1140_vm6, %v1242_v13, %v1244_v16  ;;  %v1254_v23 = vsel %vm304_vm1, %v1244_v16, 0  ;;  %v1248_v25 = vsel %vm304_vm1, %v1245_v22, 0 }
  0xb6   : > { %2441 = vmatmul.mubr.msk.bf16.vlgmr.msra.gmra.mxu1 %vm300_vm2, %v2316_v1 }
  0xb7   : > { %2445 = vmatpush3.bf16.msra.mxu1 %v1153_v14  ;;  %2446 = vmatprep.mubr.msk.bf16.mxu1 %vm2572_vm0, %v2571_v3  ;;  %v1343_v18 = vpop.permute.xlu0 %1342 }
  0xb8   : > { %2450 = vmatprep.subr.bf16.mxu1 %v2571_v3  ;;  %v1345_v20 = vpop.permute.xlu1 %1344 }
  0xb9   : > { %2321 = vmatmul.mubr.msk.bf16.vlgmr.msra.gmra.mxu0 %vm300_vm2, %v2316_v1  ;;  %v1349_v30 = vsel %vm1348_vm7, %v1343_v18, %v1345_v20 }
  0xba   : > { %1170 = vmatpush1.bf16.msra.mxu0 %v1147_v17  ;;  %1187 = vmatprep.mubr.bf16.mxu0 %v2573_v6  ;;  %v1355_v32 = vsel %vm304_vm1, %v1349_v30, 0 }
  0xbb   : > { %2327 = vmatprep.subr.msk.bf16.mxu0 %vm304_vm1, %v1246_v19  ;;  %v1347_v24 = vpop.permute.xlu0 %1346 }
  0xbc   : > { %v1448_v26 = vpop.permute.xlu1 %1447  ;;  %v1350_v27 = vsel %vm1348_vm7, %v1345_v20, %v1347_v24  ;;  %v1361_v29 = vsel %vm304_vm1, %v1347_v24, 0 }
  0xbe   : > { %2447 = vmatmul.mubr.msk.bf16.vlgmr.msra.gmra.mxu1 %vm300_vm2, %v2323_v21 }
  0xbf   : > { %2451 = vmatpush3.bf16.msra.mxu1 %v1254_v23  ;;  %2452 = vmatprep.mubr.msk.bf16.mxu1 %vm2572_vm0, %v2571_v3  ;;  %v1450_v28 = vpop.permute.xlu0 %1449 }
  0xc0   : > { %2456 = vmatprep.subr.bf16.mxu1 %v2571_v3  ;;  %v1452_v31 = vpop.permute.xlu1 %1451  ;;  %v1453_v37 = vsel %vm1348_vm7, %v1448_v26, %v1450_v28 }
  0xc1   : > { %2325 = vmatmul.mubr.msk.bf16.vlgmr.msra.gmra.mxu0 %vm300_vm2, %v2323_v21  ;;  %v1454_v34 = vsel %vm1348_vm7, %v1450_v28, %v1452_v31  ;;  %v1462_v38 = vsel %vm304_vm1, %v1452_v31, 0  ;;  %v1456_v40 = vsel %vm304_vm1, %v1453_v37, 0 }
  0xc2   : > { %1271 = vmatpush1.bf16.msra.mxu0 %v1248_v25  ;;  %1288 = vmatprep.mubr.bf16.mxu0 %v2573_v6 }
  0xc3   : > { %2331 = vmatprep.subr.msk.bf16.mxu0 %vm304_vm1, %v1350_v27  ;;  %v1551_v33 = vpop.permute.xlu0 %1550 }
  0xc4   : > { %v1553_v35 = vpop.permute.xlu1 %1552 }
  0xc5   : > { %v1557_v45 = vsel %vm1556_vm8, %v1551_v33, %v1553_v35 }
  0xc6   : > { %2453 = vmatmul.mubr.msk.bf16.vlgmr.msra.gmra.mxu1 %vm300_vm2, %v2323_v21  ;;  %v1563_v47 = vsel %vm304_vm1, %v1557_v45, 0 }
  0xc7   : > { %2457 = vmatpush3.bf16.msra.mxu1 %v1361_v29  ;;  %2458 = vmatprep.mubr.msk.bf16.mxu1 %vm2572_vm0, %v2571_v3  ;;  %v1555_v39 = vpop.permute.xlu0 %1554 }
  0xc8   : > { %2462 = vmatprep.subr.bf16.mxu1 %v2571_v3  ;;  %v1656_v41 = vpop.permute.xlu1 %1655  ;;  %v1558_v42 = vsel %vm1556_vm8, %v1553_v35, %v1555_v39  ;;  %v1569_v44 = vsel %vm304_vm1, %v1555_v39, 0 }
  0xc9   : > { %2328 = vmatmul.mubr.msk.bf16.vlgmr.msra.gmra.mxu0 %vm300_vm2, %v2323_v21  ;;  %v2344_v21 = vld [vmem:[%s2998_s2 + $0x1c] sm:$0xf] }
  0xca   : > { %1378 = vmatpush1.bf16.msra.mxu0 %v1355_v32  ;;  %1395 = vmatprep.mubr.bf16.mxu0 %v2573_v6 }
  0xcb   : > { %2334 = vmatprep.subr.msk.bf16.mxu0 %vm304_vm1, %v1454_v34  ;;  %v1658_v43 = vpop.permute.xlu0 %1657  ;;  %v2351_v34 = vld [vmem:[%s2998_s2 + $0x20] sm:$0xf] }
  0xcc   : > { %v1660_v46 = vpop.permute.xlu1 %1659  ;;  %v1661_v53 = vsel %vm1556_vm8, %v1656_v41, %v1658_v43 }
  0xcd   : > { %v1662_v49 = vsel %vm1556_vm8, %v1658_v43, %v1660_v46  ;;  %v1670_v54 = vsel %vm304_vm1, %v1660_v46, 0  ;;  %v1664_v59 = vsel %vm304_vm1, %v1661_v53, 0 }
  0xce   : > { %2459 = vmatmul.mubr.msk.bf16.vlgmr.msra.gmra.mxu1 %vm300_vm2, %v2330_v36 }
  0xcf   : > { %2463 = vmatpush3.bf16.msra.mxu1 %v1462_v38  ;;  %2464 = vmatprep.mubr.msk.bf16.mxu1 %vm2572_vm0, %v2571_v3  ;;  %v1759_v48 = vpop.permute.xlu0 %1758 }
  0xd0   : > { %2468 = vmatprep.subr.bf16.mxu1 %v2571_v3  ;;  %v1761_v50 = vpop.permute.xlu1 %1760 }
  0xd1   : > { %2332 = vmatmul.mubr.msk.bf16.vlgmr.msra.gmra.mxu0 %vm300_vm2, %v2330_v36  ;;  %v1765_v8 = vsel %vm1764_vm9, %v1759_v48, %v1761_v50 }
  0xd2   : > { %1479 = vmatpush1.bf16.msra.mxu0 %v1456_v40  ;;  %1496 = vmatprep.mubr.bf16.mxu0 %v2573_v6  ;;  %v1771_v13 = vsel %vm304_vm1, %v1765_v8, 0 }
  0xd3   : > { %2338 = vmatprep.subr.msk.bf16.mxu0 %vm304_vm1, %v1558_v42  ;;  %v1763_v56 = vpop.permute.xlu0 %1762 }
  0xd4   : > { %v1864_v60 = vpop.permute.xlu1 %1863  ;;  %v1766_v62 = vsel %vm1764_vm9, %v1761_v50, %v1763_v56  ;;  %v1777_v7 = vsel %vm304_vm1, %v1763_v56, 0 }
  0xd6   : > { %2465 = vmatmul.mubr.msk.bf16.vlgmr.msra.gmra.mxu1 %vm300_vm2, %v2330_v36 }
  0xd7   : > { %2469 = vmatpush3.bf16.msra.mxu1 %v1569_v44  ;;  %2470 = vmatprep.mubr.msk.bf16.mxu1 %vm2572_vm0, %v2571_v3  ;;  %v1866_v0 = vpop.permute.xlu0 %1865 }
  0xd8   : > { %2474 = vmatprep.subr.bf16.mxu1 %v2571_v3  ;;  %v1868_v10 = vpop.permute.xlu1 %1867  ;;  %v1869_v22 = vsel %vm1764_vm9, %v1864_v60, %v1866_v0 }
  0xd9   : > { %2335 = vmatmul.mubr.msk.bf16.vlgmr.msra.gmra.mxu0 %vm300_vm2, %v2330_v36  ;;  %v1870_v16 = vsel %vm1764_vm9, %v1866_v0, %v1868_v10  ;;  %v1878_v23 = vsel %vm304_vm1, %v1868_v10, 0  ;;  %v1872_v25 = vsel %vm304_vm1, %v1869_v22, 0 }
  0xda   : > { %1586 = vmatpush1.bf16.msra.mxu0 %v1563_v47  ;;  %1603 = vmatprep.mubr.bf16.mxu0 %v2573_v6  ;;  %v2877_v52 = vpop.f32.mrf.mxu1 }
  0xdb   : > { %2341 = vmatprep.subr.msk.bf16.mxu0 %vm304_vm1, %v1662_v49  ;;  %v2881_v55 = vpop.f32.mrf.mxu0  ;;  %v1967_v14 = vpop.permute.xlu0 %1966 }
  0xdc   : > { %v2400_v57 = vpop.f32.mrf.mxu1  ;;  %v1969_v18 = vpop.permute.xlu1 %1968 }
  0xdd   : > { %v2884_v58 = vpop.f32.mrf.mxu0  ;;  %v1973_v29 = vsel %vm1972_vm10, %v1967_v14, %v1969_v18 }
  0xde   : > { %2471 = vmatmul.mubr.msk.bf16.vlgmr.msra.gmra.mxu1 %vm300_vm2, %v2337_v51  ;;  %v392_v61 = vpop.f32.mrf.mxu1  ;;  %v1979_v32 = vsel %vm304_vm1, %v1973_v29, 0 }
  0xdf   : > { %2475 = vmatpush3.bf16.msra.mxu1 %v1670_v54  ;;  %2476 = vmatprep.mubr.msk.bf16.mxu1 %vm2572_vm0, %v2571_v3  ;;  %v352_v63 = vpop.f32.mrf.mxu0  ;;  %v1971_v24 = vpop.permute.xlu0 %1970 }
  0xe0   : > { %2480 = vmatprep.subr.bf16.mxu1 %v2571_v3  ;;  %v2401_v1 = vpop.f32.mrf.mxu1  ;;  %v2072_v26 = vpop.permute.xlu1 %2071  ;;  %v1974_v27 = vsel %vm1972_vm10, %v1969_v18, %v1971_v24  ;;  %v1985_v28 = vsel %vm304_vm1, %v1971_v24, 0 }
  0xe1   : > { %2339 = vmatmul.mubr.msk.bf16.vlgmr.msra.gmra.mxu0 %vm300_vm2, %v2337_v51  ;;  %v353_v2 = vpop.f32.mrf.mxu0 }
  0xe2   : > { %1687 = vmatpush1.bf16.msra.mxu0 %v1664_v59  ;;  %1704 = vmatprep.mubr.bf16.mxu0 %v2573_v6  ;;  %v2894_v5 = vpop.f32.mrf.mxu1 }
  0xe3   : > { %2345 = vmatprep.subr.msk.bf16.mxu0 %vm304_vm1, %v1766_v62  ;;  %v2898_v9 = vpop.f32.mrf.mxu0  ;;  %v2074_v30 = vpop.permute.xlu0 %2073 }
  0xe4   : > { %v2406_v11 = vpop.f32.mrf.mxu1  ;;  %v2076_v31 = vpop.permute.xlu1 %2075  ;;  %v2077_v35 = vsel %vm1972_vm10, %v2072_v26, %v2074_v30 }
  0xe5   : > { %v2901_v12 = vpop.f32.mrf.mxu0  ;;  %v2078_v33 = vsel %vm1972_vm10, %v2074_v30, %v2076_v31  ;;  %v2086_v36 = vsel %vm304_vm1, %v2076_v31, 0  ;;  %v2080_v37 = vsel %vm304_vm1, %v2077_v35, 0 }
  0xe6   : > { %2477 = vmatmul.mubr.msk.bf16.vlgmr.msra.gmra.mxu1 %vm300_vm2, %v2337_v51  ;;  %v502_v15 = vpop.f32.mrf.mxu1 }
  0xe7   : > { %2481 = vmatpush3.bf16.msra.mxu1 %v1777_v7  ;;  %2482 = vmatprep.mubr.msk.bf16.mxu1 %vm2572_vm0, %v2571_v3  ;;  %v462_v17 = vpop.f32.mrf.mxu0 }
  0xe8   : > { %2486 = vmatprep.subr.bf16.mxu1 %v2571_v3  ;;  %v2407_v19 = vpop.f32.mrf.mxu1 }
  0xe9   : > { %2342 = vmatmul.mubr.msk.bf16.vlgmr.msra.gmra.mxu0 %vm300_vm2, %v2337_v51  ;;  %v463_v20 = vpop.f32.mrf.mxu0 }
  0xea   : > { %1794 = vmatpush1.bf16.msra.mxu0 %v1771_v13  ;;  %1811 = vmatprep.mubr.bf16.mxu0 %v2573_v6 }
  0xeb   : > { %2348 = vmatprep.subr.msk.bf16.mxu0 %vm304_vm1, %v1870_v16 }
  0xee   : > { %2483 = vmatmul.mubr.msk.bf16.vlgmr.msra.gmra.mxu1 %vm300_vm2, %v2344_v21 }
  0xef   : > { %2487 = vmatpush3.bf16.msra.mxu1 %v1878_v23  ;;  %2488 = vmatprep.mubr.msk.bf16.mxu1 %vm2572_vm0, %v2571_v3 }
  0xf0   : > { %2492 = vmatprep.subr.bf16.mxu1 %v2571_v3  ;;  %v280_v38 = vpop.permute.xlu0 %279 }
  0xf1   : > { %2346 = vmatmul.mubr.msk.bf16.vlgmr.msra.gmra.mxu0 %vm300_vm2, %v2344_v21  ;;  %v397_v39 = vadd.f32 %v2877_v52, %v280_v38  ;;  %v395_v43 = vadd.f32 %v2881_v55, %v280_v38  ;;  %v396_v47 = vadd.f32 %v2884_v58, %v280_v38  ;;  %v507_v50 = vadd.f32 %v2894_v5, %v280_v38 }
  0xf2   : > { %1895 = vmatpush1.bf16.msra.mxu0 %v1872_v25  ;;  %1912 = vmatprep.mubr.bf16.mxu0 %v2573_v6  ;;  %v505_v52 = vadd.f32 %v2898_v9, %v280_v38  ;;  %v506_v55 = vadd.f32 %v2901_v12, %v280_v38 }
  0xf3   : > { %2352 = vmatprep.subr.msk.bf16.mxu0 %vm304_vm1, %v1974_v27 }
  0xf6   : > { %2489 = vmatmul.mubr.msk.bf16.vlgmr.msra.gmra.mxu1 %vm300_vm2, %v2344_v21 }
  0xf7   : > { %2493 = vmatpush3.bf16.msra.mxu1 %v1985_v28  ;;  %2494 = vmatprep.mubr.msk.bf16.mxu1 %vm2572_vm0, %v2571_v3 }
  0xf8   : > { %2498 = vmatprep.subr.bf16.mxu1 %v2571_v3 }
  0xf9   : > { %2349 = vmatmul.mubr.msk.bf16.vlgmr.msra.gmra.mxu0 %vm300_vm2, %v2344_v21 }
  0xfa   : > { %2002 = vmatpush1.bf16.msra.mxu0 %v1979_v32  ;;  %2019 = vmatprep.mubr.bf16.mxu0 %v2573_v6 }
  0xfb   : > { %2355 = vmatprep.subr.msk.bf16.mxu0 %vm304_vm1, %v2078_v33 }
  0xfe   : > { %2495 = vmatmul.mubr.msk.bf16.vlgmr.msra.gmra.mxu1 %vm300_vm2, %v2351_v34 }
  0xff   : > { %2499 = vmatpush3.bf16.msra.mxu1 %v2086_v36  ;;  %2500 = vmatprep.mubr.msk.bf16.mxu1 %vm2572_vm0, %v2571_v3 }
 0x101   : > { %2353 = vmatmul.mubr.msk.bf16.vlgmr.msra.gmra.mxu0 %vm300_vm2, %v2351_v34 }
 0x102   : > { %2103 = vmatpush1.bf16.msra.mxu0 %v2080_v37  ;;  %2120 = vmatprep.mubr.bf16.mxu0 %v2573_v6 }
 0x106   : > { %2501 = vmatmul.mubr.msk.bf16.vlgmr.msra.gmra.mxu1 %vm300_vm2, %v2351_v34 }
 0x109   : > { %2356 = vmatmul.mubr.msk.bf16.vlgmr.msra.gmra.mxu0 %vm300_vm2, %v2351_v34 }
 0x14c   : > { %v606_v40 = vpop.f32.mrf.mxu1 }
 0x14d   : > { %v614_v41 = vadd.f32 %v606_v40, %v397_v39 }
 0x14e   : > { %v2412_v42 = vpop.f32.mrf.mxu1 }
 0x150   : > { %v609_v46 = vpop.f32.mrf.mxu1 }
 0x151   : > { %v565_v44 = vpop.f32.mrf.mxu0 }
 0x152   : > { %v612_v45 = vadd.f32 %v565_v44, %v395_v43  ;;  %v2413_v6 = vpop.f32.mrf.mxu1 }
 0x153   : > { %v567_v48 = vpop.f32.mrf.mxu0 }
 0x154   : > { %v613_v49 = vadd.f32 %v567_v48, %v396_v47 }
 0x155   : > { %v569_v51 = vpop.f32.mrf.mxu0 }
 0x156   : > { %v707_v53 = vpop.f32.mrf.mxu1 }
 0x157   : > { %v715_v54 = vadd.f32 %v707_v53, %v507_v50  ;;  %v570_v56 = vpop.f32.mrf.mxu0 }
 0x158   : > { %v2418_v57 = vpop.f32.mrf.mxu1 }
 0x159   : > { %v666_v59 = vpop.f32.mrf.mxu0 }
 0x15a   : > { %v713_v60 = vadd.f32 %v666_v59, %v505_v52  ;;  %v710_v61 = vpop.f32.mrf.mxu1 }
 0x15b   : > { %v668_v62 = vpop.f32.mrf.mxu0 }
 0x15c   : > { %v714_v63 = vadd.f32 %v668_v62, %v506_v55  ;;  %v2419_v58 = vpop.f32.mrf.mxu1 }
 0x15d   : > { %v670_v0 = vpop.f32.mrf.mxu0 }
 0x15e   : > { %v814_v1 = vpop.f32.mrf.mxu1 }
 0x15f   : > { %v822_v2 = vadd.f32 %v814_v1, %v614_v41  ;;  %v671_v7 = vpop.f32.mrf.mxu0 }
 0x160   : > { %v2424_v5 = vpop.f32.mrf.mxu1 }
 0x161   : > { %v773_v8 = vpop.f32.mrf.mxu0 }
 0x162   : > { %v820_v10 = vadd.f32 %v773_v8, %v612_v45  ;;  %v817_v11 = vpop.f32.mrf.mxu1 }
 0x163   : > { %v775_v13 = vpop.f32.mrf.mxu0 }
 0x164   : > { %v821_v14 = vadd.f32 %v775_v13, %v613_v49  ;;  %v2425_v9 = vpop.f32.mrf.mxu1 }
 0x165   : > { %v777_v15 = vpop.f32.mrf.mxu0 }
 0x166   : > { %v915_v16 = vpop.f32.mrf.mxu1 }
 0x167   : > { %v923_v17 = vadd.f32 %v915_v16, %v715_v54  ;;  %v778_v12 = vpop.f32.mrf.mxu0 }
 0x168   : > { %v2430_v18 = vpop.f32.mrf.mxu1 }
 0x169   : > { %v874_v19 = vpop.f32.mrf.mxu0 }
 0x16a   : > { %v921_v20 = vadd.f32 %v874_v19, %v713_v60  ;;  %v918_v21 = vpop.f32.mrf.mxu1 }
 0x16b   : > { %v876_v22 = vpop.f32.mrf.mxu0 }
 0x16c   : > { %v922_v23 = vadd.f32 %v876_v22, %v714_v63  ;;  %v2431_v24 = vpop.f32.mrf.mxu1 }
 0x16d   : > { %v878_v25 = vpop.f32.mrf.mxu0 }
 0x16e   : > { %v1022_v26 = vpop.f32.mrf.mxu1 }
 0x16f   : > { %v1030_v27 = vadd.f32 %v1022_v26, %v822_v2  ;;  %v879_v28 = vpop.f32.mrf.mxu0 }
 0x170   : > { %v2436_v29 = vpop.f32.mrf.mxu1 }
 0x171   : > { %v981_v30 = vpop.f32.mrf.mxu0 }
 0x172   : > { %v1028_v31 = vadd.f32 %v981_v30, %v820_v10  ;;  %v1025_v32 = vpop.f32.mrf.mxu1 }
 0x173   : > { %v983_v33 = vpop.f32.mrf.mxu0 }
 0x174   : > { %v1029_v34 = vadd.f32 %v983_v33, %v821_v14  ;;  %v2437_v35 = vpop.f32.mrf.mxu1 }
 0x175   : > { %v985_v36 = vpop.f32.mrf.mxu0 }
 0x176   : > { %v1123_v37 = vpop.f32.mrf.mxu1 }
 0x177   : > { %v2955_v38 = vadd.f32 %v1123_v37, %v923_v17  ;;  %v986_v39 = vpop.f32.mrf.mxu0 }
 0x178   : > { %v2442_v40 = vpop.f32.mrf.mxu1 }
 0x179   : > { %v1082_v41 = vpop.f32.mrf.mxu0 }
 0x17a   : > { %v2957_v42 = vadd.f32 %v1082_v41, %v921_v20  ;;  %v1126_v43 = vpop.f32.mrf.mxu1 }
 0x17b   : > { %v1084_v44 = vpop.f32.mrf.mxu0 }
 0x17c   : > { %v2959_v45 = vadd.f32 %v1084_v44, %v922_v23  ;;  %v2443_v46 = vpop.f32.mrf.mxu1 }
 0x17d   : > { %v1086_v47 = vpop.f32.mrf.mxu0 }
 0x17e   : > { %v1230_v48 = vpop.f32.mrf.mxu1 }
 0x17f   : > { %v2961_v49 = vadd.f32 %v1230_v48, %v1030_v27  ;;  %v1087_v6 = vpop.f32.mrf.mxu0 }
 0x180   : > { %v2448_v50 = vpop.f32.mrf.mxu1 }
 0x181   : > { %v1189_v51 = vpop.f32.mrf.mxu0 }
 0x182   : > { %v2963_v53 = vadd.f32 %v1189_v51, %v1028_v31  ;;  %v1233_v54 = vpop.f32.mrf.mxu1 }
 0x183   : > { %v1191_v56 = vpop.f32.mrf.mxu0 }
 0x184   : > { %v2965_v52 = vadd.f32 %v1191_v56, %v1029_v34  ;;  %v2449_v57 = vpop.f32.mrf.mxu1 }
 0x185   : > { %v1193_v59 = vpop.f32.mrf.mxu0 }
 0x186   : > { %v1331_v55 = vpop.f32.mrf.mxu1 }
 0x187   : > { %v1194_v60 = vpop.f32.mrf.mxu0 }
 0x188   : > { %v2454_v61 = vpop.f32.mrf.mxu1 }
 0x189   : > { %v1290_v62 = vpop.f32.mrf.mxu0  ;;  %v1339_v61 = vadd.f32 %v1331_v55, %v2955_v38 }
 0x18a   : > { %v1334_v63 = vpop.f32.mrf.mxu1 }
 0x18b   : > { %v2967_v58 = vpop.f32.mrf.mxu0 }
 0x18c   : > { %v2455_v0 = vpop.f32.mrf.mxu1 }
 0x18d   : > { %v1294_v1 = vpop.f32.mrf.mxu0 }
 0x18e   : > { %v1438_v2 = vpop.f32.mrf.mxu1 }
 0x18f   : > { %v1295_v7 = vpop.f32.mrf.mxu0  ;;  %v1446_v63 = vadd.f32 %v1438_v2, %v2961_v49 }
 0x190   : > { %v2460_v5 = vpop.f32.mrf.mxu1 }
 0x191   : > { %v1397_v8 = vpop.f32.mrf.mxu0 }
 0x192   : > { %v1441_v10 = vpop.f32.mrf.mxu1 }
 0x193   : > { %v1399_v11 = vpop.f32.mrf.mxu0 }
 0x194   : > { %v2461_v13 = vpop.f32.mrf.mxu1  ;;  %v1445_v38 = vadd.f32 %v1399_v11, %v2965_v52 }
 0x195   : > { %v1401_v14 = vpop.f32.mrf.mxu0  ;;  %v1337_v13 = vadd.f32 %v1290_v62, %v2957_v42 }
 0x196   : > { %v1539_v9 = vpop.f32.mrf.mxu1  ;;  %v1444_v14 = vadd.f32 %v1397_v8, %v2963_v53 }
 0x197   : > { %v1402_v15 = vpop.f32.mrf.mxu0  ;;  %v1547_v7 = vadd.f32 %v1539_v9, %v1339_v61 }
 0x198   : > { %v2466_v16 = vpop.f32.mrf.mxu1 }
 0x199   : > { %v1498_v17 = vpop.f32.mrf.mxu0 }
 0x19a   : > { %v1542_v12 = vpop.f32.mrf.mxu1  ;;  %v1545_v55 = vadd.f32 %v1498_v17, %v1337_v13 }
 0x19b   : > { %v1500_v18 = vpop.f32.mrf.mxu0 }
 0x19c   : > { %v2467_v19 = vpop.f32.mrf.mxu1 }
 0x19d   : > { %v1502_v20 = vpop.f32.mrf.mxu0 }
 0x19e   : > { %v1646_v21 = vpop.f32.mrf.mxu1  ;;  %v1338_v20 = vadd.f32 %v2967_v58, %v2959_v45 }
 0x19f   : > { %v1503_v22 = vpop.f32.mrf.mxu0  ;;  %v1654_v5 = vadd.f32 %v1646_v21, %v1446_v63 }
 0x1a0   : > { %v2472_v23 = vpop.f32.mrf.mxu1 }
 0x1a1   : > { %v1605_v24 = vpop.f32.mrf.mxu0  ;;  %v1546_v23 = vadd.f32 %v1500_v18, %v1338_v20 }
 0x1a2   : > { %v1649_v25 = vpop.f32.mrf.mxu1  ;;  %v1652_v49 = vadd.f32 %v1605_v24, %v1444_v14 }
 0x1a3   : > { %v1607_v26 = vpop.f32.mrf.mxu0 }
 0x1a4   : > { %v2473_v27 = vpop.f32.mrf.mxu1  ;;  %v1653_v25 = vadd.f32 %v1607_v26, %v1445_v38  ;;  %v2188_v26 = vsub.s32 0, %v2633_v4 }
 0x1a5   : > { %v1609_v28 = vpop.f32.mrf.mxu0 }
 0x1a6   : > { %v1747_v29 = vpop.f32.mrf.mxu1 }
 0x1a7   : > { %v1610_v30 = vpop.f32.mrf.mxu0  ;;  %v1755_v16 = vadd.f32 %v1747_v29, %v1547_v7 }
 0x1a8   : > { %v2478_v31 = vpop.f32.mrf.mxu1 }
 0x1a9   : > { %v1706_v32 = vpop.f32.mrf.mxu0 }
 0x1aa   : > { %v1750_v33 = vpop.f32.mrf.mxu1  ;;  %v1753_v42 = vadd.f32 %v1706_v32, %v1545_v55  ;;  %v2196_v32 = vsub.s32 2, %v2633_v4 }
 0x1ab   : > { %v1708_v34 = vpop.f32.mrf.mxu0 }
 0x1ac   : > { %v2479_v35 = vpop.f32.mrf.mxu1  ;;  %v1754_v28 = vadd.f32 %v1708_v34, %v1546_v23 }
 0x1ad   : > { %v1710_v36 = vpop.f32.mrf.mxu0 }
 0x1ae   : > { %v1854_v37 = vpop.f32.mrf.mxu1 }
 0x1af   : > { %v1711_v39 = vpop.f32.mrf.mxu0  ;;  %v1862_v12 = vadd.f32 %v1854_v37, %v1654_v5 }
 0x1b0   : > { %v2484_v40 = vpop.f32.mrf.mxu1 }
 0x1b1   : > { %v1813_v41 = vpop.f32.mrf.mxu0 }
 0x1b2   : > { %v1857_v43 = vpop.f32.mrf.mxu1  ;;  %v1860_v62 = vadd.f32 %v1813_v41, %v1652_v49  ;;  %v2184_v41 = vld [vmem:[%s3000_s4] sm:$0x7] }
 0x1b3   : > { %v1815_v44 = vpop.f32.mrf.mxu0  ;;  %v2192_v43 = vsub.s32 1, %v2633_v4 }
 0x1b4   : > { %v2485_v46 = vpop.f32.mrf.mxu1  ;;  %v1861_v29 = vadd.f32 %v1815_v44, %v1653_v25 }
 0x1b5   : > { %v1817_v47 = vpop.f32.mrf.mxu0 }
 0x1b6   : > { %v1955_v48 = vpop.f32.mrf.mxu1 }
 0x1b7   : > { %v1818_v6 = vpop.f32.mrf.mxu0  ;;  %v1963_v22 = vadd.f32 %v1955_v48, %v1755_v16 }
 0x1b8   : > { %v2490_v50 = vpop.f32.mrf.mxu1 }
 0x1b9   : > { %v1914_v51 = vpop.f32.mrf.mxu0 }
 0x1ba   : > { %v1958_v54 = vpop.f32.mrf.mxu1  ;;  %v1961_v30 = vadd.f32 %v1914_v51, %v1753_v42  ;;  %v2197_v51 = vrot.slane %v2184_v41, %v2196_v32 }
 0x1bb   : > { %v1916_v56 = vpop.f32.mrf.mxu0 }
 0x1bc   : > { %v2491_v57 = vpop.f32.mrf.mxu1  ;;  %v1962_v17 = vadd.f32 %v1916_v56, %v1754_v28 }
 0x1bd   : > { %v1918_v59 = vpop.f32.mrf.mxu0  ;;  %v2189_v57 = vrot.slane %v2184_v41, %v2188_v26 }
 0x1be   : > { %v2062_v60 = vpop.f32.mrf.mxu1  ;;  %v2193_v59 = vrot.slane %v2184_v41, %v2192_v43 }
 0x1bf   : > { %v1919_v0 = vpop.f32.mrf.mxu0  ;;  %v2070_v9 = vadd.f32 %v2062_v60, %v1862_v12 }
 0x1c0   : > { %v2496_v1 = vpop.f32.mrf.mxu1 }
 0x1c1   : > { %v2021_v10 = vpop.f32.mrf.mxu0  ;;  %v2174_v58 = vmax.f32 %v2070_v9, 0.0 }
 0x1c2   : > { %v2065_v15 = vpop.f32.mrf.mxu1  ;;  %v2068_v31 = vadd.f32 %v2021_v10, %v1860_v62 }
 0x1c3   : > { %v2023_v19 = vpop.f32.mrf.mxu0 }
 0x1c4   : > { %v2497_v2 = vpop.f32.mrf.mxu1  ;;  %v2069_v24 = vadd.f32 %v2023_v19, %v1861_v29  ;;  %v2172_v37 = vmax.f32 %v2068_v31, 0.0  ;;  %v2204_v19 = vld [vmem:[%s266_s15] sm:$0x1] }
 0x1c5   : > { %v2025_v21 = vpop.f32.mrf.mxu0 }
 0x1c6   : > { %v2163_v53 = vpop.f32.mrf.mxu1  ;;  %v2173_v46 = vmax.f32 %v2069_v24, 0.0 }
 0x1c7   : > { %v2171_v8 = vadd.f32 %v2163_v53, %v1963_v22  ;;  %v2026_v27 = vpop.f32.mrf.mxu0 }
 0x1c8   : > { %v2502_v45 = vpop.f32.mrf.mxu1 }
 0x1c9   : > { %v2177_v52 = vmax.f32 %v2171_v8, 0.0  ;;  %v2122_v11 = vpop.f32.mrf.mxu0 }
 0x1ca   : > { %v2169_v33 = vadd.f32 %v2122_v11, %v1961_v30  ;;  %v2166_v35 = vpop.f32.mrf.mxu1 }
 0x1cb   : > { %v2180_v36 = vsub.f32 %v2174_v58, %v2177_v52  ;;  %v2124_v18 = vpop.f32.mrf.mxu0 }
 0x1cc   : > { %v2175_v39 = vmax.f32 %v2169_v33, 0.0  ;;  %v2170_v34 = vadd.f32 %v2124_v18, %v1962_v17  ;;  %v2503_v40 = vpop.f32.mrf.mxu1 }
 0x1cd   : > { %v2126_v44 = vpop.f32.mrf.mxu0  ;;  %v2183_v6 = vand.u32 2147483647, %v2180_v36 }
 0x1ce   : > { %v2178_v47 = vsub.f32 %v2172_v37, %v2175_v39  ;;  %v2176_v48 = vmax.f32 %v2170_v34, 0.0 }
 0x1cf   : > { %v2127_v50 = vpop.f32.mrf.mxu0  ;;  %v2203_v61 = vmul.f32 %v2197_v51, %v2183_v6 }
 0x1d0   : > { %v2181_v54 = vand.u32 2147483647, %v2178_v47  ;;  %v2179_v56 = vsub.f32 %v2173_v46, %v2176_v48 }
 0x1d1   : > { %v2207_v7 = vsel %vm2206_vm11, %v2203_v61, 0.0 }
 0x1d2   : > { %v2182_v60 = vand.u32 2147483647, %v2179_v56  ;;  %v2201_v63 = vmul.f32 %v2189_v57, %v2181_v54 }
 0x1d4   : > { %v2202_v0 = vmul.f32 %v2193_v59, %v2182_v60 }
 0x1d6   : > { %v2205_v1 = vadd.f32 %v2202_v0, %v2201_v63 }
 0x1d8   : > { %v2208_v4 = vadd.f32 %v2207_v7, %v2205_v1 }
 0x1da   : > { %2209 = vadd.xlane.f32.xlu1 %v2208_v4 }
 0x263   : > { %v2210_v5 = vpop.xlane.xlu1 %2209 }
 0x264   : > { %v2211_v10 = vrot.slane %v2210_v5, 4 }
 0x266   : > { %v2212_v13 = vadd.f32 %v2211_v10, %v2210_v5 }
 0x268   : > { %v2213_v14 = vrot.slane %v2212_v13, 2 }
 0x26a   : > { %v2214_v15 = vadd.f32 %v2213_v14, %v2212_v13 }
 0x26c   : > { %v2215_v16 = vrot.slane %v2214_v15, 1 }
 0x26e   : > { %v2216_v12 = vadd.f32 %v2215_v16, %v2214_v15 }
 0x270   : > { %2505 = vpush %v2216_v12 }
 0x2a1   : > { %s2506_s16 = spop %2505 }
 0x2a2   : > { %v2218_v20 = vstv %s2506_s16 }
 0x2a3   : > { %v2219_v38 = vadd.f32 %v2218_v20, %v2204_v19 }
 0x2a5   : > { %2221 = vst.msk [vmem:[%s266_s15] sm:$0x1] %vm272_vm12, %v2219_v38 }
 0x2a6 PF: > { %s15_s20 = sadd.s32 1, %s2568_s20   ;;  %s3002_s18 = smov %s2564_s19 }
 0x2a7   : > { %p12_p5 = scmp.ge.s32.totalorder %s15_s20, 4   ;;  %s3003_s19 = smov %s3005_s21 }
 0x2a9   :  { %14 = sbr.rel (!%p12_p5) target bundleno = 2 (0x2), region = 85 }

</bundles_post_ra>
